<compile_context>
chip_gen: v5e
topology: v5e:2x2
jax: 0.10.0
libtpu: 0.0.40
codegen_flags: <defaults>
</compile_context>

<pallas_src>
import numpy as np
import jax
import jax.numpy as jnp
from jax import lax
from jax.experimental import pallas as pl
from jax.experimental.pallas import tpu as pltpu

LRELU_SLOPE = 0.1

# (cin, cout, kernel, stride, groups, padding) -- from DiscriminatorS.__init__
CONV_CFGS = [
    (1, 128, 15, 1, 1, 7),
    (128, 128, 41, 2, 4, 20),
    (128, 256, 41, 2, 16, 20),
    (256, 512, 41, 4, 16, 20),
    (512, 1024, 41, 4, 16, 20),
    (1024, 1024, 41, 1, 16, 20),
    (1024, 1024, 5, 1, 1, 2),
]
POST_CFG = (1024, 1, 3, 1, 1, 1)

# Groups packed per MXU matmul (block-diagonal weight). Chosen so packed output channels
# >= 128 lanes while keeping the GPx weight inflation modest (don't densify L4/L5).
GROUP_PACK = [1, 4, 16, 8, 2, 2, 1]
POST_PACK = 1

# TODO(synk): weight_norm/spectral_norm are init-time reparametrizations of the weight
# tensor; plain effective weights are initialized directly (no checkpoint to load).


def _make_conv_kernel(S, Q, T_out, relu):
    """Packed grouped conv: sum over S polyphases x Q taps of (T_out,Cin_p)@(Cin_p,co) MXU dots."""

    def kernel(x_ref, w_ref, b_ref, o_ref):
        co = o_ref.shape[-1]

        def tap(r, q, acc):
            xs = x_ref[0, 0, r, pl.ds(q, T_out), :]          # contiguous bf16 load
            wk = w_ref[0, r, q, :, :]                        # (Cin_p, co) bf16
            return acc + jnp.dot(xs, wk, preferred_element_type=jnp.float32)

        acc = jnp.zeros((T_out, co), jnp.float32)
        if Q <= 8:
            # short tap loops: full static unroll
            for r in range(S):
                for q in range(Q):
                    acc = tap(r, q, acc)
        else:
            # long tap loops (K up to 41): fori_loop bounds vreg live ranges
            for r in range(S):
                acc = lax.fori_loop(0, Q, lambda q, a, r=r: tap(r, q, a), acc, unroll=4)

        acc = acc + b_ref[0, 0, :][None, :].astype(jnp.float32)
        if relu:
            acc = jnp.where(acc >= 0, acc, LRELU_SLOPE * acc)
        o_ref[0, 0, :, :] = acc.astype(o_ref.dtype)

    return kernel


def conv1d_pallas(x, w, b, *, stride, padding, groups, relu, group_pack, co_tile_max=256):
    """Grouped 1D conv via Pallas.

    x: (B, T, Cin) f32; w: (Cout, Cin//groups, K) f32; b: (Cout,) f32.
    Returns (B, T_out, Cout) f32.
    """
    B, T, Cin = x.shape
    Cout, Cin_g, K = w.shape
    G = groups
    assert Cin == Cin_g * G and Cout % G == 0
    Cout_g = Cout // G
    GP = group_pack
    assert G % GP == 0
    NP = G // GP
    Cin_p, Cout_p = GP * Cin_g, GP * Cout_g

    S = stride
    T_pad = T + 2 * padding
    T_out = (T_pad - K) // S + 1
    Q = -(-K // S)                       # taps per polyphase (ceil(K / S))
    T_ph = T_out + Q - 1                 # per-phase time window the kernel reads
    total = S * T_ph

    # ---- glue: pad time, polyphase split, pack groups, cast to bf16 ----
    x_p = jnp.pad(x, ((0, 0), (padding, padding), (0, 0)))
    if total >= T_pad:
        x_p = jnp.pad(x_p, ((0, 0), (0, total - T_pad), (0, 0)))
    else:
        # extra tail is only ever hit by zero-padded taps; safe to drop
        x_p = x_p[:, :total, :]
    # time index t = u*S + r -> (phase r, intra-phase u); channels are pack-major contiguous
    xg = x_p.reshape(B, T_ph, S, NP, Cin_p).transpose(0, 3, 2, 1, 4)       # (B,NP,S,T_ph,Cin_p)
    xg = xg.astype(jnp.bfloat16)

    # Block-diagonal packed weights: wp[p, r, q, gi*Cin_g+ci, go*Cout_g+co], zero for gi != go,
    # and zero for padded taps (q*S + r >= K).
    K_pad = Q * S
    wt = jnp.pad(w, ((0, 0), (0, 0), (0, K_pad - K)))
    wt = wt.reshape(NP, GP, Cout_g, Cin_g, Q, S)
    eye = jnp.eye(GP, dtype=wt.dtype)
    wp = jnp.einsum("pgocqr,gh->prqgcho", wt, eye)
    wp = wp.reshape(NP, S, Q, Cin_p, Cout_p).astype(jnp.bfloat16)

    bp = b.reshape(NP, 1, Cout_p).astype(jnp.float32)

    co_tile = Cout_p if Cout_p <= co_tile_max else co_tile_max
    assert Cout_p % co_tile == 0
    CT = Cout_p // co_tile

    # TODO(synk): for long audio (T >> 1k) add a T_out tile grid axis with a halo'd input
    # window so the x block and f32 accumulator stay within v7x's 64 MiB VMEM.
    out = pl.pallas_call(
        _make_conv_kernel(S, Q, T_out, relu),
        out_shape=jax.ShapeDtypeStruct((B, NP, T_out, Cout_p), jnp.float32),
        grid_spec=pltpu.PrefetchScalarGridSpec(
            num_scalar_prefetch=0,
            # batch innermost: weight/bias block indices are constant across it, so the
            # (potentially multi-MB) weight tile stays VMEM-resident for the whole batch.
            grid=(NP, CT, B),
            in_specs=[
                pl.BlockSpec((1, 1, S, T_ph, Cin_p), lambda p, c, bb: (bb, p, 0, 0, 0)),
                pl.BlockSpec((1, S, Q, Cin_p, co_tile), lambda p, c, bb: (p, 0, 0, 0, c)),
                pl.BlockSpec((1, 1, co_tile), lambda p, c, bb: (p, 0, c)),
            ],
            out_specs=pl.BlockSpec((1, 1, T_out, co_tile), lambda p, c, bb: (bb, p, 0, c)),
        ),
        compiler_params=pltpu.CompilerParams(
            dimension_semantics=("parallel", "parallel", "parallel")),
    )(xg, wp, bp)

    # (B, NP, T_out, Cout_p) -> (B, T_out, Cout); packed channels are already in original order.
    return out.transpose(0, 2, 1, 3).reshape(B, T_out, Cout)


def discriminator_s_forward(x_ncl, params):
    """x_ncl: (B, 1, T) like PyTorch. Returns (flat (B, T_last), fmap list in NCL layout)."""
    x = jnp.transpose(x_ncl, (0, 2, 1)).astype(jnp.float32)    # internal (B, T, C)
    fmap = []

    # --- Layer 0 (Cin=1): fold the K=15 taps into the contraction dim (im2col). ---
    w0, b0 = params["convs"][0]
    _, _, k0, _s0, _g0, p0 = CONV_CFGS[0]
    _, T, _ = x.shape
    t_out0 = T + 2 * p0 - k0 + 1
    x_sq = jnp.pad(x[..., 0], ((0, 0), (p0, p0)))                              # (B, T + 2*p0)
    cols = jnp.stack([x_sq[:, k:k + t_out0] for k in range(k0)], axis=-1)      # (B, T_out, 15)
    kc = 16                                                                    # pad contraction to sublane multiple
    cols = jnp.pad(cols, ((0, 0), (0, 0), (0, kc - k0)))
    w_eff = jnp.pad(w0[:, 0, :], ((0, 0), (0, kc - k0)))[:, :, None]           # (128, 16, 1)
    x = conv1d_pallas(cols, w_eff, b0, stride=1, padding=0, groups=1,
                      relu=True, group_pack=1)
    fmap.append(jnp.transpose(x, (0, 2, 1)))

    # --- Layers 1..6: packed grouped convs. ---
    # TODO(synk): chain layers in the packed (B, NP, S, T, Cin_p) layout and fold the pad
    # into the index_map to avoid the per-layer HBM relayout; kept NCL glue for clarity.
    for (w, b), cfg, gp in zip(params["convs"][1:], CONV_CFGS[1:], GROUP_PACK[1:]):
        _, _, _, s, g, p = cfg
        x = conv1d_pallas(x, w, b, stride=s, padding=p, groups=g, relu=True, group_pack=gp)
        fmap.append(jnp.transpose(x, (0, 2, 1)))

    # --- conv_post (no activation). ---
    w, b = params["conv_post"]
    _, _, _, s, g, p = POST_CFG
    x = conv1d_pallas(x, w, b, stride=s, padding=p, groups=g, relu=False, group_pack=POST_PACK)
    x_ncl_out = jnp.transpose(x, (0, 2, 1))
    fmap.append(x_ncl_out)
    x_flat = x_ncl_out.reshape(x_ncl_out.shape[0], -1)          # torch.flatten(x, 1, -1)
    return x_flat, fmap


def reference_forward(x_ncl, params, *, quantize=True):
    """Pure-JAX reference (lax conv). With quantize=True it applies the same bf16 rounding
    of x / w that the Pallas kernels use (accumulation stays f32), so the comparison only
    measures the kernel's conv/group/stride/pad/bias/LeakyReLU math."""

    def qz(v):
        return v.astype(jnp.bfloat16).astype(jnp.float32) if quantize else v

    def conv(x, w, b, s, p, g):
        y = lax.conv_general_dilated(
            qz(x), qz(w), window_strides=(s,), padding=[(p, p)],
            dimension_numbers=("NCH", "OIH", "NCH"),
            feature_group_count=g, precision=lax.Precision.HIGHEST,
            preferred_element_type=jnp.float32)
        return y + b[None, :, None]

    x = x_ncl.astype(jnp.float32)
    fmap = []
    for (w, b), (_, _, _, s, g, p) in zip(params["convs"], CONV_CFGS):
        x = conv(x, w, b, s, p, g)
        x = jnp.where(x >= 0, x, LRELU_SLOPE * x)
        fmap.append(x)
    w, b = params["conv_post"]
    _, _, _, s, g, p = POST_CFG
    x = conv(x, w, b, s, p, g)
    fmap.append(x)
    return x.reshape(x.shape[0], -1), fmap


def init_params(key):
    def init_conv(k, cin, cout, ks, groups):
        wk, bk = jax.random.split(k)
        fan_in = (cin // groups) * ks
        bound = 1.0 / np.sqrt(fan_in)
        w = jax.random.uniform(wk, (cout, cin // groups, ks), jnp.float32, -bound, bound)
        b = jax.random.uniform(bk, (cout,), jnp.float32, -bound, bound)
        return w, b

    keys = jax.random.split(key, len(CONV_CFGS) + 1)
    params = {"convs": []}
    for kk, (cin, cout, ks, _s, g, _p) in zip(keys[:-1], CONV_CFGS):
        params["convs"].append(init_conv(kk, cin, cout, ks, g))
    cin, cout, ks, _s, g, _p = POST_CFG
    params["conv_post"] = init_conv(keys[-1], cin, cout, ks, g)
    return params


if __name__ == "__main__":
    key = jax.random.PRNGKey(0)
    pkey, xkey = jax.random.split(key)
    params = init_params(pkey)

    B, T = 2, 128
    x = jax.random.normal(xkey, (B, 1, T), dtype=jnp.float32)

    out, fmap = discriminator_s_forward(x, params)
    out = jax.block_until_ready(out)
    fmap = [jax.block_until_ready(f) for f in fmap]

    ref_out, ref_fmap = reference_forward(x, params)
    ref_out = jax.block_until_ready(ref_out)

    assert out.shape == ref_out.shape, (out.shape, ref_out.shape)
    np.testing.assert_allclose(np.asarray(out), np.asarray(ref_out), rtol=2e-2, atol=2e-2)
    for f, rf in zip(fmap, ref_fmap):
        assert f.shape == rf.shape, (f.shape, rf.shape)
        np.testing.assert_allclose(np.asarray(f), np.asarray(rf), rtol=2e-2, atol=2e-2)

    print("KERNEL_OK")
</pallas_src>

<mosaic_0001>
module attributes {stable_mosaic.version = 11 : i64} {
  func.func @kernel(%arg0: i32, %arg1: i32, %arg2: i32, %arg3: memref<1x1x1x128x16xbf16, #tpu.memory_space<vmem>>, %arg4: memref<1x1x1x16x128xbf16, #tpu.memory_space<vmem>>, %arg5: memref<1x1x128xf32, #tpu.memory_space<vmem>>, %arg6: memref<1x1x128x128xf32, #tpu.memory_space<vmem>>) attributes {dimension_semantics = [#tpu.dimension_semantics<parallel>, #tpu.dimension_semantics<parallel>, #tpu.dimension_semantics<parallel>], iteration_bounds = array<i64: 1, 1, 2>, scalar_prefetch = 0 : i64, scratch_operands = 0 : i64, tpu.core_type = #tpu.core_type<tc>, window_params = [{transform_indices = @transform_0, window_bounds = array<i64: 1, 1, 1, 128, 16>}, {transform_indices = @transform_1, window_bounds = array<i64: 1, 1, 1, 16, 128>}, {transform_indices = @transform_2, window_bounds = array<i64: 1, 1, 128>}, {transform_indices = @transform_3, window_bounds = array<i64: 1, 1, 128, 128>}]} {
    %cst = arith.constant 0.000000e+00 : f32
    %0 = vector.broadcast %cst : f32 to vector<128x128xf32>
    %c0 = arith.constant 0 : index
    %c0_0 = arith.constant 0 : index
    %c0_1 = arith.constant 0 : index
    %c0_2 = arith.constant 0 : index
    %c0_3 = arith.constant 0 : index
    %1 = vector.load %arg3[%c0, %c0_0, %c0_1, %c0_2, %c0_3] : memref<1x1x1x128x16xbf16, #tpu.memory_space<vmem>>, vector<1x1x1x128x16xbf16>
    %2 = vector.shape_cast %1 : vector<1x1x1x128x16xbf16> to vector<128x16xbf16>
    %c0_4 = arith.constant 0 : index
    %c0_5 = arith.constant 0 : index
    %c0_6 = arith.constant 0 : index
    %c0_7 = arith.constant 0 : index
    %c0_8 = arith.constant 0 : index
    %3 = vector.load %arg4[%c0_4, %c0_5, %c0_6, %c0_7, %c0_8] : memref<1x1x1x16x128xbf16, #tpu.memory_space<vmem>>, vector<1x1x1x16x128xbf16>
    %4 = vector.shape_cast %3 : vector<1x1x1x16x128xbf16> to vector<16x128xbf16>
    %cst_9 = arith.constant dense<0.000000e+00> : vector<128x128xf32>
    %5 = tpu.matmul %2, %4, %cst_9 {dimension_numbers = #tpu.dot_dimension_numbers<[1], [0], [0], [1], [0, 0, 1, 1], [], []>} : vector<128x16xbf16>, vector<16x128xbf16>, vector<128x128xf32> -> vector<128x128xf32>
    %6 = arith.addf %0, %5 : vector<128x128xf32>
    %c0_10 = arith.constant 0 : index
    %c0_11 = arith.constant 0 : index
    %c0_12 = arith.constant 0 : index
    %7 = vector.load %arg5[%c0_10, %c0_11, %c0_12] : memref<1x1x128xf32, #tpu.memory_space<vmem>>, vector<1x1x128xf32>
    %8 = vector.shape_cast %7 : vector<1x1x128xf32> to vector<128xf32>
    %9 = vector.shape_cast %8 : vector<128xf32> to vector<1x128xf32>
    %10 = vector.broadcast %9 : vector<1x128xf32> to vector<128x128xf32>
    %11 = arith.addf %6, %10 : vector<128x128xf32>
    %cst_13 = arith.constant 0.000000e+00 : f32
    %12 = vector.broadcast %cst_13 : f32 to vector<128x128xf32>
    %13 = arith.cmpf oge, %11, %12 : vector<128x128xf32>
    %cst_14 = arith.constant 1.000000e-01 : f32
    %14 = vector.broadcast %cst_14 : f32 to vector<128x128xf32>
    %15 = arith.mulf %14, %11 : vector<128x128xf32>
    %16 = arith.select %13, %11, %15 : vector<128x128xi1>, vector<128x128xf32>
    %c0_15 = arith.constant 0 : index
    %c0_16 = arith.constant 0 : index
    %c0_17 = arith.constant 0 : index
    %c0_18 = arith.constant 0 : index
    %17 = vector.load %arg6[%c0_15, %c0_16, %c0_17, %c0_18] : memref<1x1x128x128xf32, #tpu.memory_space<vmem>>, vector<1x1x128x128xf32>
    %18 = vector.shape_cast %17 : vector<1x1x128x128xf32> to vector<128x128xf32>
    %19 = vector.shape_cast %16 : vector<128x128xf32> to vector<1x1x128x128xf32>
    tpu.vector_store %arg6[%c0_15, %c0_16, %c0_17, %c0_18], %19 {strides = array<i32>} : memref<1x1x128x128xf32, #tpu.memory_space<vmem>>, vector<1x1x128x128xf32>,
    return
  }
  func.func @transform_0(%arg0: i32, %arg1: i32, %arg2: i32) -> (i32, i32, i32, i32, i32) {
    %c0_i32 = arith.constant 0 : i32
    %c0_i32_0 = arith.constant 0 : i32
    %c0_i32_1 = arith.constant 0 : i32
    %c0_i32_2 = arith.constant 0 : i32
    return %arg2, %arg0, %c0_i32, %c0_i32_0, %c0_i32_1 : i32, i32, i32, i32, i32
  }
  func.func @transform_1(%arg0: i32, %arg1: i32, %arg2: i32) -> (i32, i32, i32, i32, i32) {
    %c0_i32 = arith.constant 0 : i32
    %c0_i32_0 = arith.constant 0 : i32
    %c0_i32_1 = arith.constant 0 : i32
    %c0_i32_2 = arith.constant 0 : i32
    return %arg0, %c0_i32, %c0_i32_0, %c0_i32_1, %arg1 : i32, i32, i32, i32, i32
  }
  func.func @transform_2(%arg0: i32, %arg1: i32, %arg2: i32) -> (i32, i32, i32) {
    %c0_i32 = arith.constant 0 : i32
    %c0_i32_0 = arith.constant 0 : i32
    return %arg0, %c0_i32, %arg1 : i32, i32, i32
  }
  func.func @transform_3(%arg0: i32, %arg1: i32, %arg2: i32) -> (i32, i32, i32, i32) {
    %c0_i32 = arith.constant 0 : i32
    %c0_i32_0 = arith.constant 0 : i32
    return %arg2, %arg0, %c0_i32, %arg1 : i32, i32, i32, i32
  }
}

</mosaic_0001>

<bundles_post_ra>
// kernel: tpu_custom_call.1
= control target key start
LH: loop header
LB: loop body
LE: loop exit
PB: predicated region body
PF: predicated region fallthrough
CT: control target
= control target key end

     0   :  { %8 = vsyncpa [#allocation3], 0  ;;  %s995_s0 = inlined_call_operand.vmem [shape: bf16[2,1,1,128,16], index: 0, kind: input, shape index: {}]   ;;  %s996_s1 = inlined_call_operand.vmem [shape: bf16[1,1,1,16,128], index: 1, kind: input, shape index: {}]   ;;  %s997_s2 = inlined_call_operand.vmem [shape: f32[1,1,128], index: 2, kind: input, shape index: {}]   ;;  %s998_s3 = inlined_call_operand.hbm [shape: f32[2,1,128,128], index: 3, kind: output, shape index: {}]  }
   0x1   :  { %10 = vsyncpa [#allocation3 + $0x1], 0  ;;  %s843_s12 = smov 0   ;;  %s845_s13 = smov 0  }
   0x2   :  { %s847_s14 = smov 0   ;;  %s849_s15 = smov 0  }
   0x3   :  { %s851_s16 = smov 0   ;;  %s853_s17 = smov 0  }
   0x4 LB: > { %s610_s18 = sadd.s32 4294967295, %s819_s17   ;;  %s611_s19 = sadd.s32 4294967294, %s819_s17   ;;  %s819_s17 = sphi %s853_s17, %s16_s17   ;;  %s815_s16 = sphi %s851_s16, %s1005_s16   ;;  %s811_s15 = sphi %s849_s15, %s1004_s15   ;;  %s807_s14 = sphi %s847_s14, %s1003_s14   ;;  %s803_s13 = sphi %s845_s13, %s1002_s13   ;;  %s799_s12 = sphi %s843_s12, %s1001_s12  }
   0x5   : > { %s28_s20 = sadd.s32 1, %s815_s16  ;;  %s130_s21 = sadd.s32 1, %s807_s14 }
   0x6   : > { %p29_p0 = scmp.ge.s32.totalorder %s28_s20, 2  ;;  %p140_p1 = scmp.ne.s32.totalorder %s807_s14, %s803_s13 }
   0x7   : > { %p141_p2 = scmp.eq.s32.totalorder %s610_s18, 1  ;;  %p146_p3 = scmp.ne.s32.totalorder %s803_s13, %s799_s12 }
   0x8   : > { %s1007_s20 = smov (%p29_p0, %s28_s20), 0  ;;  %p147_p5 = scmp.eq.s32.totalorder %s611_s19, 1 }
   0x9   : > { %p883_p4 = por %p141_p2, %p140_p1  ;;  %s123_s23 = ssub.s32 %s815_s16, %s1007_s20 }
   0xa   : > { %p616_p6 = scmp.ge.s32.totalorder %s819_s17, 1  ;;  %p128_p7 = scmp.eq.s32.totalorder %s123_s23, 0 }
   0xb   : > { %p890_p8 = por %p147_p5, %p146_p3  ;;  %p197_p9 = scmp.lt.s32.totalorder %s819_s17, 3 }
   0xc   : > { %s896_s25 = scalar_select %p128_p7, %s807_s14, %s130_s21  }
   0xd   : > { %p198_p10 = pnand %p616_p6, %p197_p9 }
   0xe   : > { %p239_p11 = scmp.lt.s32.totalorder (!%p198_p10), %s811_s15, 1  ;;  %s236_s6 = sand.u32 (!%p198_p10), 1, %s803_s13  }
   0xf   : > { %201 = sbr.rel (%p198_p10) target bundleno = 192 (0xc0), region = 32  ;;  %s617_s9 = sshll.u32 (!%p198_p10), %s236_s6, 7 }
  0x10   : > { %s924_s10 = scalar_lea.vmem (!%p198_p10), [#allocation2], %s617_s9  ;;  %s679_s11 = sshll.u32 (!%p198_p10), %s811_s15, 7 }
  0x11   : > { %s485_s21 = sshll.u32 (!%p198_p10), %s924_s10, 4  ;;  %s470_s26 = scalar_lea.sflag (!%p198_p10), [#allocation3], %s236_s6  ;;  %s486_s21 = int_to_ptr.vmem [resolvable:$true] %s485_s21 }
  0x12   : > { %s761_s4 = scalar_lea.hbm (!%p198_p10), %s998_s3, 256 }
  0x14   : > { %v678_v0 = vld [vmem:[%s996_s1] sm:$0xff]  ;;  %s240_s28 = scalar_select %p239_p11, %s811_s15, 1  ;;  %vm331_vm0 = vcmask 130048  }
  0x15   : > { %363 = vmatpush.bf16.msra.mxu0 %v678_v0  ;;  %680 = vmatpush.bf16.msra.mxu1 %v678_v0  ;;  %v918_v9 = vld [vmem:[%s997_s2] ss:$0 sm:$0xff]  ;;  %s484_s15 = scalar_lea.hbm %s998_s3, %s679_s11 }
  0x16   : > { %681 = vmatpush.bf16.msra.mxu2 %v678_v0  ;;  %682 = vmatpush.bf16.msra.mxu3 %v678_v0  ;;  %s669_s29 = sshll.u32 %s240_s28, 6  ;;  %s487_s23 = sshll.u32 %s484_s15, 4  ;;  %s488_s23 = int_to_ptr.hbm [resolvable:$true] %s487_s23 }
  0x17   : > { %s247_s5 = scalar_lea.vmem %s995_s0, %s669_s29  ;;  %s755_s27 = sshra.s32 %s488_s23, 4  ;;  %s756_s27 = int_to_ptr.hbm [resolvable:$true] %s755_s27 }
  0x18   : > { %v670_v1 = vld [vmem:[%s247_s5] sm:$0xff]  ;;  %v672_v2 = vld [vmem:[%s247_s5 + $0x10] sm:$0xff]  ;;  %v671_v5 = vld [vmem:[%s247_s5 + $0x8] sm:$0xff]  ;;  %s757_s28 = scalar_lea.hbm %s756_s27, 128  ;;  %p762_p1 = scmp.lt.s32.totalorder %s756_s27, %s998_s3 }
  0x19   : > { %v674_v3 = vld [vmem:[%s247_s5 + $0x20] sm:$0xff]  ;;  %v676_v4 = vld [vmem:[%s247_s5 + $0x30] sm:$0xff]  ;;  %656 = vmatmul.msk.bf16.vlgmr.msra.gmra.mxu0 %vm331_vm0, %v670_v1  ;;  %658 = vmatmul.msk.bf16.vlgmr.msra.gmra.mxu1 %vm331_vm0, %v672_v2  ;;  %v673_v6 = vld [vmem:[%s247_s5 + $0x18] sm:$0xff]  ;;  %p758_p12 = scmp.ne.s32.totalorder %s756_s27, %s757_s28  ;;  %p763_p2 = scmp.lt.s32.totalorder %s761_s4, %s757_s28 }
  0x1a   : > { %660 = vmatmul.msk.bf16.vlgmr.msra.gmra.mxu2 %vm331_vm0, %v674_v3  ;;  %662 = vmatmul.msk.bf16.vlgmr.msra.gmra.mxu3 %vm331_vm0, %v676_v4  ;;  %v675_v7 = vld [vmem:[%s247_s5 + $0x28] sm:$0xff]  ;;  %v677_v8 = vld [vmem:[%s247_s5 + $0x38] sm:$0xff] }
  0x1b   : > { %p759_p13 = pnand %p758_p12, %p883_p4  ;;  %p764_p3 = por %p763_p2, %p762_p1 }
  0x1d   : > { %p760_p0 = pneg %p759_p13 }
  0x1f   : > { %p765_p5 = pnand %p764_p3, %p760_p0 }
  0x29   : > { %657 = vmatmul.msk.bf16.gmra.mxu0 %vm331_vm0, %v671_v5  ;;  %659 = vmatmul.msk.bf16.gmra.mxu1 %vm331_vm0, %v673_v6 }
  0x2a   : > { %661 = vmatmul.msk.bf16.gmra.mxu2 %vm331_vm0, %v675_v7  ;;  %663 = vmatmul.msk.bf16.gmra.mxu3 %vm331_vm0, %v677_v8 }
  0x96   : > { %v365_v10 = vpop.f32.mrf.mxu0  ;;  %v375_v11 = vpop.f32.mrf.mxu1 }
  0x97   : > { %v366_v12 = vadd.f32 %v918_v9, %v365_v10  ;;  %v376_v13 = vadd.f32 %v918_v9, %v375_v11 }
  0x99   : > { %vm405_vm1 = vcmp.ge.f32.partialorder %v366_v12, 0.0  ;;  %v421_v14 = vmul.f32 0.1, %v366_v12  ;;  %vm409_vm2 = vcmp.ge.f32.partialorder %v376_v13, 0.0  ;;  %v425_v15 = vmul.f32 0.1, %v376_v13 }
  0x9b   : > { %v437_v16 = vsel %vm405_vm1, %v366_v12, %v421_v14  ;;  %v441_v17 = vsel %vm409_vm2, %v376_v13, %v425_v15 }
  0x9c   : > { %453 = vst [vmem:[%s924_s10] sm:$0xff] %v437_v16 }
  0x9d   : > { %457 = vst [vmem:[%s924_s10 + $0x20] sm:$0xff] %v441_v17  ;;  %v385_v18 = vpop.f32.mrf.mxu2  ;;  %v395_v19 = vpop.f32.mrf.mxu3 }
  0x9e   : > { %v386_v20 = vadd.f32 %v918_v9, %v385_v18  ;;  %v396_v21 = vadd.f32 %v918_v9, %v395_v19  ;;  %v367_v22 = vpop.f32.mrf.mxu0  ;;  %v377_v23 = vpop.f32.mrf.mxu1 }
  0x9f   : > { %v368_v24 = vadd.f32 %v918_v9, %v367_v22  ;;  %v378_v25 = vadd.f32 %v918_v9, %v377_v23 }
  0xa0   : > { %vm413_vm3 = vcmp.ge.f32.partialorder %v386_v20, 0.0  ;;  %v429_v26 = vmul.f32 0.1, %v386_v20  ;;  %vm417_vm4 = vcmp.ge.f32.partialorder %v396_v21, 0.0  ;;  %v433_v27 = vmul.f32 0.1, %v396_v21 }
  0xa1   : > { %vm406_vm5 = vcmp.ge.f32.partialorder %v368_v24, 0.0  ;;  %v422_v28 = vmul.f32 0.1, %v368_v24  ;;  %vm410_vm6 = vcmp.ge.f32.partialorder %v378_v25, 0.0  ;;  %v426_v29 = vmul.f32 0.1, %v378_v25 }
  0xa2   : > { %v445_v30 = vsel %vm413_vm3, %v386_v20, %v429_v26  ;;  %v449_v31 = vsel %vm417_vm4, %v396_v21, %v433_v27 }
  0xa3   : > { %461 = vst [vmem:[%s924_s10 + $0x40] sm:$0xff] %v445_v30  ;;  %v438_v32 = vsel %vm406_vm5, %v368_v24, %v422_v28  ;;  %v442_v33 = vsel %vm410_vm6, %v378_v25, %v426_v29 }
  0xa4   : > { %465 = vst [vmem:[%s924_s10 + $0x60] sm:$0xff] %v449_v31 }
  0xa5   : > { %454 = vst [vmem:[%s924_s10 + $0x8] sm:$0xff] %v438_v32  ;;  %v387_v34 = vpop.f32.mrf.mxu2  ;;  %v397_v35 = vpop.f32.mrf.mxu3 }
  0xa6   : > { %458 = vst [vmem:[%s924_s10 + $0x28] sm:$0xff] %v442_v33  ;;  %v388_v36 = vadd.f32 %v918_v9, %v387_v34  ;;  %v398_v37 = vadd.f32 %v918_v9, %v397_v35  ;;  %v370_v38 = vpop.f32.mrf.mxu0  ;;  %v380_v39 = vpop.f32.mrf.mxu1 }
  0xa7   : > { %v371_v40 = vadd.f32 %v918_v9, %v370_v38  ;;  %v381_v41 = vadd.f32 %v918_v9, %v380_v39 }
  0xa8   : > { %vm414_vm7 = vcmp.ge.f32.partialorder %v388_v36, 0.0  ;;  %v430_v42 = vmul.f32 0.1, %v388_v36  ;;  %vm418_vm8 = vcmp.ge.f32.partialorder %v398_v37, 0.0  ;;  %v434_v43 = vmul.f32 0.1, %v398_v37 }
  0xa9   : > { %vm407_vm9 = vcmp.ge.f32.partialorder %v371_v40, 0.0  ;;  %v423_v44 = vmul.f32 0.1, %v371_v40  ;;  %vm411_vm10 = vcmp.ge.f32.partialorder %v381_v41, 0.0  ;;  %v427_v45 = vmul.f32 0.1, %v381_v41 }
  0xaa   : > { %v446_v46 = vsel %vm414_vm7, %v388_v36, %v430_v42  ;;  %v450_v47 = vsel %vm418_vm8, %v398_v37, %v434_v43 }
  0xab   : > { %462 = vst [vmem:[%s924_s10 + $0x48] sm:$0xff] %v446_v46  ;;  %v439_v48 = vsel %vm407_vm9, %v371_v40, %v423_v44  ;;  %v443_v49 = vsel %vm411_vm10, %v381_v41, %v427_v45 }
  0xac   : > { %466 = vst [vmem:[%s924_s10 + $0x68] sm:$0xff] %v450_v47 }
  0xad   : > { %455 = vst [vmem:[%s924_s10 + $0x10] sm:$0xff] %v439_v48  ;;  %v390_v50 = vpop.f32.mrf.mxu2  ;;  %v400_v51 = vpop.f32.mrf.mxu3 }
  0xae   : > { %459 = vst [vmem:[%s924_s10 + $0x30] sm:$0xff] %v443_v49  ;;  %v391_v52 = vadd.f32 %v918_v9, %v390_v50  ;;  %v401_v53 = vadd.f32 %v918_v9, %v400_v51  ;;  %v372_v54 = vpop.f32.mrf.mxu0  ;;  %v382_v55 = vpop.f32.mrf.mxu1 }
  0xaf   : > { %v373_v56 = vadd.f32 %v918_v9, %v372_v54  ;;  %v383_v57 = vadd.f32 %v918_v9, %v382_v55 }
  0xb0   : > { %vm415_vm11 = vcmp.ge.f32.partialorder %v391_v52, 0.0  ;;  %v431_v58 = vmul.f32 0.1, %v391_v52  ;;  %vm419_vm12 = vcmp.ge.f32.partialorder %v401_v53, 0.0  ;;  %v435_v59 = vmul.f32 0.1, %v401_v53 }
  0xb1   : > { %vm408_vm13 = vcmp.ge.f32.partialorder %v373_v56, 0.0  ;;  %v424_v60 = vmul.f32 0.1, %v373_v56  ;;  %vm412_vm14 = vcmp.ge.f32.partialorder %v383_v57, 0.0  ;;  %v428_v61 = vmul.f32 0.1, %v383_v57 }
  0xb2   : > { %v447_v62 = vsel %vm415_vm11, %v391_v52, %v431_v58  ;;  %v451_v63 = vsel %vm419_vm12, %v401_v53, %v435_v59 }
  0xb3   : > { %463 = vst [vmem:[%s924_s10 + $0x50] sm:$0xff] %v447_v62  ;;  %v440_v0 = vsel %vm408_vm13, %v373_v56, %v424_v60  ;;  %v444_v1 = vsel %vm412_vm14, %v383_v57, %v428_v61 }
  0xb4   : > { %467 = vst [vmem:[%s924_s10 + $0x70] sm:$0xff] %v451_v63 }
  0xb5   : > { %456 = vst [vmem:[%s924_s10 + $0x18] sm:$0xff] %v440_v0  ;;  %v392_v2 = vpop.f32.mrf.mxu2  ;;  %v402_v3 = vpop.f32.mrf.mxu3 }
  0xb6   : > { %460 = vst [vmem:[%s924_s10 + $0x38] sm:$0xff] %v444_v1  ;;  %v393_v4 = vadd.f32 %v918_v9, %v392_v2  ;;  %v403_v5 = vadd.f32 %v918_v9, %v402_v3 }
  0xb8   : > { %vm416_vm15 = vcmp.ge.f32.partialorder %v393_v4, 0.0  ;;  %v432_v6 = vmul.f32 0.1, %v393_v4  ;;  %vm420_vm0 = vcmp.ge.f32.partialorder %v403_v5, 0.0  ;;  %v436_v7 = vmul.f32 0.1, %v403_v5 }
  0xba   : > { %v448_v8 = vsel %vm416_vm15, %v393_v4, %v432_v6  ;;  %v452_v10 = vsel %vm420_vm0, %v403_v5, %v436_v7 }
  0xbb   : > { %464 = vst [vmem:[%s924_s10 + $0x58] sm:$0xff] %v448_v8 }
  0xbc   : > { %468 = vst [vmem:[%s924_s10 + $0x78] sm:$0xff] %v452_v10 }
  0xbd   : > { %768 = shalt.err (!%p765_p5)
}
  0xbe   : > { %s821_s6 = smov 128   ;;  %s822_s8 = smov 8  }
  0xbf   : > { %683 = dma.vmem_to_hbm [thread:$0]  (%p883_p4), %s486_s21, 2048, %s488_s23, %s470_s26, %s821_s6, %s821_s6, %s822_s8  }
  0xc0 PF: > { %p689_p6 = scmp.ge.s32.totalorder %s819_s17, 2  ;;  %s502_s9 = sand.u32 1, %s799_s12  }
  0xc1   : > { %s503_s10 = scalar_lea.sflag [#allocation3], %s502_s9 }
  0xc2   : > { %p686_p7 = pnand %p689_p6, %p890_p8 }
  0xc4   : > { %p687_p9 = pneg %p686_p7 }
  0xc6   : > { %794 = dma.done.wait (%p687_p9), %s503_s10, 2048  }
  0xc7   : > { %796 = vsyncadd (%p687_p9), %s503_s10, 4294965248  ;;  %s16_s17 = sadd.s32 1, %s819_s17   ;;  %s1001_s12 = smov %s803_s13 }
  0xc8   : > { %p13_p10 = scmp.ge.s32.totalorder %s16_s17, 4   ;;  %s1002_s13 = smov %s807_s14 }
  0xc9   : > { %s1003_s14 = smov %s896_s25  ;;  %s1004_s15 = smov %s815_s16 }
  0xca   : > { %s1005_s16 = smov %s1007_s20  ;;  %15 = sbr.rel (!%p13_p10) target bundleno = 4 (0x4), region = 73 }
  0xcf   :  { %509 = vsyncpa [#allocation3], 1 }
  0xd0   :  { %511 = vsyncpa [#allocation3 + $0x1], 1 }

</bundles_post_ra>
